<compile_context>
chip_gen: v7x
topology: tpu7x:2x2x1
jax: 0.10.0
libtpu: 0.0.40
codegen_flags: <defaults>
</compile_context>

<pallas_src>
import functools

import jax
import jax.numpy as jnp
from jax.experimental import pallas as pl
from jax.experimental.pallas import tpu as pltpu


# ---------------------------------------------------------------------------
# Helpers
# ---------------------------------------------------------------------------

def _cdiv(a, b):
    return -(-a // b)


def _round_up(x, m):
    return _cdiv(x, m) * m


def _pick_tile(dim, target, align, min_blocks=1):
    """Choose (tile, padded_dim) with tile % align == 0 and padded % tile == 0.

    Balances the block count so padding never balloons: e.g. dim=520,
    target=1024 -> tile=264, padded=528 (not 1024)."""
    dim = max(int(dim), 1)
    target = max(int(target), align)
    padded_min = _round_up(dim, align)
    if min_blocks <= 1 and padded_min <= target:
        return padded_min, padded_min
    nblocks = max(min_blocks, _cdiv(padded_min, target))
    tile = _round_up(_cdiv(dim, nblocks), align)
    return tile, tile * nblocks


def _vmem_limit_bytes():
    """Generation-aware VMEM limit: ~3/4 of physical, capped at 96 MiB.

    v5e/v6e (128 MiB physical) -> 96 MiB; v7x (64 MiB per TC) -> 48 MiB.
    Falls back to the conservative 48 MiB if the query is unavailable."""
    cap = None
    try:
        info = pltpu.get_tpu_info()
        cap = int(getattr(info, "vmem_capacity_bytes", 0)) or None
    except Exception:
        cap = None
    if cap is None:
        cap = 64 * 1024 * 1024
    return min((cap * 3) // 4, 96 * 1024 * 1024)


# ---------------------------------------------------------------------------
# Kernels
# ---------------------------------------------------------------------------

def _linear_kernel_single(x_ref, w_ref, b_ref, o_ref):
    # Single K tile: x (TM, K_pad) @ w (K_pad, TN) + b (1, TN) -> o (TM, TN).
    # No reduction loop, no accumulator scratch, no init/finalize predicates.
    acc = jnp.dot(x_ref[...], w_ref[...], preferred_element_type=jnp.float32)
    o_ref[...] = (acc + b_ref[...].astype(jnp.float32)).astype(o_ref.dtype)


def _linear_kernel_acc_inplace(x_ref, w_ref, b_ref, o_ref):
    # Multi-K with f32 output: the output block stays VMEM-resident across the
    # K ("arbitrary") axis, so accumulate straight into it (no scratch).
    @pl.when(pl.program_id(2) == 0)
    def _():
        o_ref[...] = jnp.broadcast_to(b_ref[...].astype(jnp.float32), o_ref.shape)

    o_ref[...] += jnp.dot(x_ref[...], w_ref[...], preferred_element_type=jnp.float32)


def _linear_kernel_acc_scratch(x_ref, w_ref, b_ref, o_ref, acc_ref):
    # Multi-K with narrow output dtype: f32 scratch accumulator (P3 pattern).
    @pl.when(pl.program_id(2) == 0)
    def _():
        acc_ref[...] = jnp.zeros_like(acc_ref)

    acc_ref[...] += jnp.dot(x_ref[...], w_ref[...], preferred_element_type=jnp.float32)

    @pl.when(pl.program_id(2) == pl.num_programs(2) - 1)
    def _():
        o_ref[...] = (acc_ref[...] + b_ref[...].astype(jnp.float32)).astype(o_ref.dtype)


# ---------------------------------------------------------------------------
# Linear wrapper
# ---------------------------------------------------------------------------

def _pallas_linear(x_flat, weight, bias):
    """y = x_flat @ weight.T + bias (nn.Linear forward) via a Pallas TPU kernel.

    x_flat: (M, K); weight: (N, K) (PyTorch nn.Linear layout); bias: (N,).
    The weight is transposed once here to (K, N) so the kernel issues a plain
    NN matmul on the MXU.
    """
    M, K = x_flat.shape
    N, K2 = weight.shape
    assert K == K2, (K, K2)

    out_dtype = x_flat.dtype
    x_item = jnp.dtype(x_flat.dtype).itemsize
    w_item = jnp.dtype(weight.dtype).itemsize
    o_item = jnp.dtype(out_dtype).itemsize
    b_item = jnp.dtype(bias.dtype).itemsize
    sublane = {4: 8, 2: 16, 1: 32}.get(x_item, 8)

    vmem_limit = _vmem_limit_bytes()
    budget = max(vmem_limit - 4 * 1024 * 1024, 16 * 1024 * 1024)

    # --- K (contraction) ----------------------------------------------------
    MAX_SINGLE_K = 1024
    K_pad_min = _round_up(K, 128)
    if K_pad_min <= MAX_SINGLE_K:
        TK, K_pad = K_pad_min, K_pad_min
    else:
        TK, K_pad = _pick_tile(K, 512, 128)
    single_k = (K_pad == TK)

    # --- N (output lanes; lane-dense stores) ---------------------------------
    N_pad_min = _round_up(N, 128)
    # Hot TimeDistributed path: keep the whole (K_pad, N_pad) weight VMEM-resident.
    weight_resident = single_k and (2 * K_pad * N_pad_min * w_item <= budget // 3)
    if weight_resident:
        TN, N_pad = N_pad_min, N_pad_min
    else:
        TN, N_pad = _pick_tile(N, 512, 128)

    # --- M (rows): size TM from the remaining VMEM budget --------------------
    use_scratch_acc = (not single_k) and (jnp.dtype(out_dtype) != jnp.dtype(jnp.float32))
    fixed_bytes = 2 * TK * TN * w_item + 2 * N_pad * b_item
    per_row_bytes = 2 * TK * x_item + 2 * TN * o_item + (4 * TN if use_scratch_acc else 0)
    tm_cap = max(sublane, ((budget - fixed_bytes) // per_row_bytes) // sublane * sublane)
    tm_target = max(sublane, min(1024, tm_cap))
    min_blocks_m = 2 if M >= 2 * sublane else 1   # >=2 parallel blocks for v7x's 2 TCs
    TM, M_pad = _pick_tile(M, tm_target, sublane, min_blocks=min_blocks_m)

    # --- Pad operands (only when needed) -------------------------------------
    x_p = x_flat
    if (M_pad, K_pad) != (M, K):
        x_p = jnp.pad(x_flat, ((0, M_pad - M), (0, K_pad - K)))
    w_t = jnp.transpose(weight)                       # (K, N): one-time wrapper transpose
    if (K_pad, N_pad) != (K, N):
        w_t = jnp.pad(w_t, ((0, K_pad - K), (0, N_pad - N)))
    b_p = bias if N_pad == N else jnp.pad(bias, (0, N_pad - N))
    b_p = b_p.reshape(1, N_pad)

    Mb, Nb = M_pad // TM, N_pad // TN

    if single_k:
        grid = (Mb, Nb)
        kernel = _linear_kernel_single
        in_specs = [
            pl.BlockSpec((TM, K_pad), lambda i, j: (i, 0)),   # x tile (streamed once)
            pl.BlockSpec((K_pad, TN), lambda i, j: (0, j)),   # weight (resident if Nb==1)
            pl.BlockSpec((1, TN), lambda i, j: (0, j)),       # bias
        ]
        out_specs = pl.BlockSpec((TM, TN), lambda i, j: (i, j))
        scratch_shapes = []
        dims = ("parallel", "parallel")
        x_reads, w_reads = 1, (1 if Nb == 1 else Mb)
    else:
        Kb = K_pad // TK
        grid = (Mb, Nb, Kb)
        in_specs = [
            pl.BlockSpec((TM, TK), lambda i, j, k: (i, k)),
            pl.BlockSpec((TK, TN), lambda i, j, k: (k, j)),
            pl.BlockSpec((1, TN), lambda i, j, k: (0, j)),
        ]
        out_specs = pl.BlockSpec((TM, TN), lambda i, j, k: (i, j))
        dims = ("parallel", "parallel", "arbitrary")
        x_reads, w_reads = Nb, Mb
        if use_scratch_acc:
            kernel = _linear_kernel_acc_scratch
            scratch_shapes = [pltpu.VMEM((TM, TN), jnp.float32)]
        else:
            kernel = _linear_kernel_acc_inplace
            scratch_shapes = []

    flops = 2 * M_pad * N_pad * K_pad
    bytes_accessed = (x_p.size * x_item * x_reads
                      + w_t.size * w_item * w_reads
                      + b_p.size * b_item
                      + M_pad * N_pad * o_item)

    out = pl.pallas_call(
        kernel,
        out_shape=jax.ShapeDtypeStruct((M_pad, N_pad), out_dtype),
        grid_spec=pltpu.PrefetchScalarGridSpec(
            num_scalar_prefetch=0,
            grid=grid,
            in_specs=in_specs,
            out_specs=out_specs,
            scratch_shapes=scratch_shapes,
        ),
        compiler_params=pltpu.CompilerParams(
            dimension_semantics=dims,
            vmem_limit_bytes=vmem_limit,
        ),
        cost_estimate=pl.CostEstimate(
            flops=flops, transcendentals=0, bytes_accessed=bytes_accessed),
    )(x_p, w_t, b_p)

    if (M_pad, N_pad) != (M, N):
        out = out[:M, :N]
    return out


# ---------------------------------------------------------------------------
# TimeDistributedRAPID forward
# ---------------------------------------------------------------------------

def time_distributed_rapid(x, weight, bias, batch_first=False):
    """Forward pass of TimeDistributedRAPID(nn.Linear(K, N), batch_first)."""
    if x.ndim <= 2:
        return _pallas_linear(x, weight, bias)

    K = x.shape[-1]
    x_reshape = x.reshape(-1, K)                 # x.contiguous().view(-1, F)
    y = _pallas_linear(x_reshape, weight, bias)  # inner module (hot path)
    n_out = y.shape[-1]
    if batch_first:
        # Reproduces PyTorch's y.contiguous().view(x.size(0), y.size(-1), -1)
        # (a raw reinterpretation of the buffer, NOT a permute of the result).
        y = y.reshape(x.shape[0], n_out, -1)
    else:
        # y.view(-1, x.size(1), y.size(-1))
        y = y.reshape(-1, x.shape[1], n_out)
    return y


if __name__ == "__main__":
    # Small shapes: seq=8, batch=2, in_features=32, out_features=64
    T, B, K, N = 8, 2, 32, 64

    key = jax.random.PRNGKey(0)
    kx, kw, kb = jax.random.split(key, 3)
    x = jax.random.normal(kx, (T, B, K), dtype=jnp.float32)
    weight = jax.random.normal(kw, (N, K), dtype=jnp.float32) * 0.05  # nn.Linear weight (N, K)
    bias = jax.random.normal(kb, (N,), dtype=jnp.float32) * 0.05      # nn.Linear bias (N,)

    # batch_first=False path
    fwd = jax.jit(functools.partial(time_distributed_rapid, batch_first=False))
    y = fwd(x, weight, bias)
    jax.block_until_ready(y)
    y_ref = (x.reshape(-1, K) @ weight.T + bias).reshape(-1, B, N)
    assert y.shape == (T, B, N), y.shape
    assert jnp.allclose(y, y_ref, atol=1e-5, rtol=1e-5)

    # batch_first=True path (PyTorch .view() semantics)
    fwd_bf = jax.jit(functools.partial(time_distributed_rapid, batch_first=True))
    y_bf = fwd_bf(x, weight, bias)
    jax.block_until_ready(y_bf)
    y_bf_ref = (x.reshape(-1, K) @ weight.T + bias).reshape(T, N, -1)
    assert y_bf.shape == (T, N, B), y_bf.shape
    assert jnp.allclose(y_bf, y_bf_ref, atol=1e-5, rtol=1e-5)

    # 2-D path (module applied directly)
    x2d = x[0]                                   # (B, K)
    y2d = jax.jit(time_distributed_rapid)(x2d, weight, bias)
    jax.block_until_ready(y2d)
    assert jnp.allclose(y2d, x2d @ weight.T + bias, atol=1e-5, rtol=1e-5)

    print("KERNEL_OK")
</pallas_src>

<mosaic_0001>
module attributes {stable_mosaic.version = 11 : i64} {
  func.func @_linear_kernel_single(%arg0: i32, %arg1: i32, %arg2: memref<8x128xf32, #tpu.memory_space<vmem>>, %arg3: memref<128x128xf32, #tpu.memory_space<vmem>>, %arg4: memref<1x128xf32, #tpu.memory_space<vmem>>, %arg5: memref<8x128xf32, #tpu.memory_space<vmem>>) attributes {dimension_semantics = [#tpu.dimension_semantics<parallel>, #tpu.dimension_semantics<parallel>], iteration_bounds = array<i64: 2, 1>, scalar_prefetch = 0 : i64, scratch_operands = 0 : i64, tpu.core_type = #tpu.core_type<tc>, window_params = [{transform_indices = @transform_0, window_bounds = array<i64: 8, 128>}, {transform_indices = @transform_1, window_bounds = array<i64: 128, 128>}, {transform_indices = @transform_2, window_bounds = array<i64: 1, 128>}, {transform_indices = @transform_3, window_bounds = array<i64: 8, 128>}]} {
    %c0 = arith.constant 0 : index
    %c0_0 = arith.constant 0 : index
    %0 = vector.load %arg2[%c0, %c0_0] : memref<8x128xf32, #tpu.memory_space<vmem>>, vector<8x128xf32>
    %c0_1 = arith.constant 0 : index
    %c0_2 = arith.constant 0 : index
    %1 = vector.load %arg3[%c0_1, %c0_2] : memref<128x128xf32, #tpu.memory_space<vmem>>, vector<128x128xf32>
    %cst = arith.constant dense<0.000000e+00> : vector<8x128xf32>
    %2 = tpu.matmul %0, %1, %cst {dimension_numbers = #tpu.dot_dimension_numbers<[1], [0], [0], [1], [0, 0, 1, 1], [], []>} : vector<8x128xf32>, vector<128x128xf32>, vector<8x128xf32> -> vector<8x128xf32>
    %c0_3 = arith.constant 0 : index
    %c0_4 = arith.constant 0 : index
    %3 = vector.load %arg4[%c0_3, %c0_4] : memref<1x128xf32, #tpu.memory_space<vmem>>, vector<1x128xf32>
    %4 = vector.broadcast %3 : vector<1x128xf32> to vector<8x128xf32>
    %5 = arith.addf %2, %4 : vector<8x128xf32>
    %c0_5 = arith.constant 0 : index
    %c0_6 = arith.constant 0 : index
    %6 = vector.load %arg5[%c0_5, %c0_6] : memref<8x128xf32, #tpu.memory_space<vmem>>, vector<8x128xf32>
    tpu.vector_store %arg5[%c0_5, %c0_6], %5 {strides = array<i32>} : memref<8x128xf32, #tpu.memory_space<vmem>>, vector<8x128xf32>,
    return
  }
  func.func @transform_0(%arg0: i32, %arg1: i32) -> (i32, i32) {
    %c0_i32 = arith.constant 0 : i32
    %c0_i32_0 = arith.constant 0 : i32
    return %arg0, %c0_i32 : i32, i32
  }
  func.func @transform_1(%arg0: i32, %arg1: i32) -> (i32, i32) {
    %c0_i32 = arith.constant 0 : i32
    %c0_i32_0 = arith.constant 0 : i32
    return %c0_i32, %arg1 : i32, i32
  }
  func.func @transform_2(%arg0: i32, %arg1: i32) -> (i32, i32) {
    %c0_i32 = arith.constant 0 : i32
    %c0_i32_0 = arith.constant 0 : i32
    return %c0_i32, %arg1 : i32, i32
  }
  func.func @transform_3(%arg0: i32, %arg1: i32) -> (i32, i32) {
    %c0_i32 = arith.constant 0 : i32
    return %arg0, %arg1 : i32, i32
  }
}

</mosaic_0001>

<bundles_post_ra>
// kernel: time_distributed_rapid.1
= control target key start
LH: loop header
LB: loop body
LE: loop exit
PB: predicated region body
PF: predicated region fallthrough
CT: control target
= control target key end

     0   :  { %8 = vsyncpa [#allocation3], 0  ;;  %s831_s0 = inlined_call_operand.vmem [shape: f32[16,128], index: 0, kind: input, shape index: {}]   ;;  %s832_s1 = inlined_call_operand.vmem [shape: f32[128,128], index: 1, kind: input, shape index: {}]   ;;  %s833_s2 = inlined_call_operand.vmem [shape: f32[1,128], index: 2, kind: input, shape index: {}]   ;;  %s834_s3 = inlined_call_operand.hbm [shape: f32[16,128], index: 3, kind: output, shape index: {}]  }
   0x1   :  { %10 = vsyncpa [#allocation3 + $0x1], 0  ;;  %s668_s12 = smov 0   ;;  %s670_s13 = smov 0  }
   0x2   :  { %s672_s14 = smov 0   ;;  %s674_s15 = smov 0  }
   0x3   :  { %s676_s16 = smov 0   ;;  %s678_s17 = smov 0  }
   0x4 LB: > { %s416_s18 = sadd.s32 4294967295, %s642_s17   ;;  %s417_s19 = sadd.s32 4294967294, %s642_s17   ;;  %s642_s17 = sphi %s678_s17, %s16_s17   ;;  %s638_s16 = sphi %s676_s16, %s841_s16   ;;  %s634_s15 = sphi %s674_s15, %s840_s15   ;;  %s630_s14 = sphi %s672_s14, %s839_s14   ;;  %s626_s13 = sphi %s670_s13, %s838_s13   ;;  %s622_s12 = sphi %s668_s12, %s837_s12  }
   0x5   : > { %s28_s20 = sadd.s32 1, %s638_s16  ;;  %s115_s21 = sadd.s32 1, %s630_s14 }
   0x6   : > { %p30_p0 = scmp.ge.s32.totalorder %s28_s20, 2  ;;  %p125_p1 = scmp.ne.s32.totalorder %s630_s14, %s626_s13 }
   0x7   : > { %p126_p2 = scmp.eq.s32.totalorder %s416_s18, 1  ;;  %p131_p3 = scmp.ne.s32.totalorder %s626_s13, %s622_s12 }
   0x8   : > { %s843_s20 = smov (%p30_p0, %s28_s20), 0  ;;  %p132_p5 = scmp.eq.s32.totalorder %s417_s19, 1 }
   0x9   : > { %p708_p4 = por %p126_p2, %p125_p1  ;;  %s110_s23 = ssub.s32 %s638_s16, %s843_s20 }
   0xa   : > { %p422_p6 = scmp.ge.s32.totalorder %s642_s17, 1  ;;  %p113_p7 = scmp.eq.s32.totalorder %s110_s23, 0 }
   0xb   : > { %p715_p8 = por %p132_p5, %p131_p3  ;;  %p170_p9 = scmp.lt.s32.totalorder %s642_s17, 3 }
   0xc   : > { %s721_s25 = scalar_select %p113_p7, %s630_s14, %s115_s21  }
   0xd   : > { %p171_p10 = pnand %p422_p6, %p170_p9 }
   0xe   : > { %v212_v0 = vld [vmem:[%s832_s1] sm:$0xff] (!%p171_p10)  ;;  %v213_v1 = vld [vmem:[%s832_s1 + $0x8] sm:$0xff] (!%p171_p10)  ;;  %v214_v2 = vld [vmem:[%s832_s1 + $0x10] sm:$0xff] (!%p171_p10)  ;;  %v644_v3 = vmov (!%p171_p10), 0.0|0.0   ;;  %vm645_vm0 = vmmov (!%p171_p10), 0   ;;  %v646_v6 = vmov (!%p171_p10), 0.0  }
   0xf   : > { %174 = sbr.rel (%p171_p10) target bundleno = 276 (0x114), region = 32  ;;  %482 = vmatprep.subr.bf16.mxu0 (!%p171_p10), %v644_v3  ;;  %v483_v4 = vpack.c.bf16 (!%p171_p10), %v213_v1, %v212_v0  ;;  %v215_v5 = vld [vmem:[%s832_s1 + $0x18] sm:$0xff] (!%p171_p10)  ;;  %479 = vmatprep.mubr.msk.f32.mxu0 (!%p171_p10), %vm645_vm0, %v646_v6  ;;  %v216_v8 = vld [vmem:[%s832_s1 + $0x20] sm:$0xff] (!%p171_p10)  ;;  %v217_v9 = vld [vmem:[%s832_s1 + $0x28] sm:$0xff] (!%p171_p10)  ;;  %p200_p11 = scmp.lt.s32.totalorder (!%p171_p10), %s634_s15, 1 }
  0x10   : > { %v486_v7 = vpack.c.bf16 (!%p171_p10), %v215_v5, %v214_v2  ;;  %v489_v10 = vpack.c.bf16 (!%p171_p10), %v217_v9, %v216_v8  ;;  %v218_v11 = vld [vmem:[%s832_s1 + $0x30] sm:$0xff] (!%p171_p10)  ;;  %v219_v12 = vld [vmem:[%s832_s1 + $0x38] sm:$0xff] (!%p171_p10)  ;;  %v220_v14 = vld [vmem:[%s832_s1 + $0x40] sm:$0xff] (!%p171_p10)  ;;  %s197_s29 = sand.u32 (!%p171_p10), 1, %s626_s13   ;;  %s427_s6 = sshll.u32 (!%p171_p10), %s634_s15, 7 }
  0x11   : > { %484 = vmatpush3.bf16.msra.mxu0 (!%p171_p10), %v483_v4  ;;  %v492_v13 = vpack.c.bf16 (!%p171_p10), %v219_v12, %v218_v11  ;;  %v221_v15 = vld [vmem:[%s832_s1 + $0x48] sm:$0xff] (!%p171_p10)  ;;  %v222_v17 = vld [vmem:[%s832_s1 + $0x50] sm:$0xff] (!%p171_p10)  ;;  %v223_v18 = vld [vmem:[%s832_s1 + $0x58] sm:$0xff] (!%p171_p10)  ;;  %s423_s30 = sshll.u32 (!%p171_p10), %s197_s29, 3  ;;  %s784_s11 = scalar_lea.hbm (!%p171_p10), %s834_s3, %s427_s6 }
  0x12   : > { %485 = vmatprep.subr.bf16.mxu0 (!%p171_p10), %v644_v3  ;;  %v495_v16 = vpack.c.bf16 (!%p171_p10), %v221_v15, %v220_v14  ;;  %v498_v19 = vpack.c.bf16 (!%p171_p10), %v223_v18, %v222_v17  ;;  %v224_v20 = vld [vmem:[%s832_s1 + $0x60] sm:$0xff] (!%p171_p10)  ;;  %v225_v21 = vld [vmem:[%s832_s1 + $0x68] sm:$0xff] (!%p171_p10)  ;;  %v226_v23 = vld [vmem:[%s832_s1 + $0x70] sm:$0xff] (!%p171_p10)  ;;  %s199_s7 = scalar_lea.vmem (!%p171_p10), [#allocation2], %s423_s30  ;;  %s307_s18 = scalar_lea.sflag (!%p171_p10), [#allocation3], %s197_s29 }
  0x13   : > { %v501_v22 = vpack.c.bf16 (!%p171_p10), %v225_v21, %v224_v20  ;;  %v227_v24 = vld [vmem:[%s832_s1 + $0x78] sm:$0xff] (!%p171_p10)  ;;  %v425_v27 = vld [vmem:[%s833_s2] ss:$0 sm:$0xff] (!%p171_p10)  ;;  %s321_s8 = sshll.u32 (!%p171_p10), %s199_s7, 4  ;;  %s786_s8 = int_to_ptr.vmem [resolvable:$true] %s321_s8 }
  0x14   : > { %v504_v25 = vpack.c.bf16 (!%p171_p10), %v227_v24, %v226_v23  ;;  %s564_s19 = scalar_lea.vmem (!%p171_p10), %s786_s8, 128 }
  0x15   : > { %487 = vmatpush3.bf16.msra.mxu0 (!%p171_p10), %v486_v7  ;;  %p565_p12 = scmp.ne.s32.totalorder (!%p171_p10), %s786_s8, %s564_s19 }
  0x16   : > { %488 = vmatprep.subr.bf16.mxu0 %v644_v3  ;;  %s201_s10 = scalar_select %p200_p11, %s634_s15, 1 }
  0x17   : > { %p566_p13 = pnand %p565_p12, %p708_p4  ;;  %s647_s15 = smov [#allocation2]  }
  0x18   : > { %s424_s23 = sshll.u32 %s201_s10, 3  ;;  %s568_s21 = sshll.u32 %s647_s15, 4  ;;  %s569_s21 = int_to_ptr.vmem [resolvable:$false] %s568_s21 }
  0x19   : > { %490 = vmatpush3.bf16.msra.mxu0 %v489_v10  ;;  %s203_s28 = scalar_lea.vmem %s831_s0, %s424_s23  ;;  %p567_p0 = pneg %p566_p13 }
  0x1a   : > { %491 = vmatprep.subr.bf16.mxu0 %v644_v3  ;;  %v211_v26 = vld [vmem:[%s203_s28] sm:$0xff]  ;;  %s570_s23 = scalar_lea.vmem %s569_s21, 256  ;;  %p571_p1 = scmp.lt.s32.totalorder %s786_s8, %s569_s21 }
  0x1b   : > { %p572_p2 = scmp.lt.s32.totalorder %s570_s23, %s564_s19 }
  0x1d   : > { %493 = vmatpush3.bf16.msra.mxu0 %v492_v13  ;;  %p573_p3 = por %p572_p2, %p571_p1 }
  0x1e   : > { %494 = vmatprep.subr.bf16.mxu0 %v644_v3 }
  0x1f   : > { %p574_p5 = pnand %p573_p3, %p567_p0 }
  0x21   : > { %496 = vmatpush3.bf16.msra.mxu0 %v495_v16 }
  0x22   : > { %497 = vmatprep.subr.bf16.mxu0 %v644_v3 }
  0x25   : > { %499 = vmatpush3.bf16.msra.mxu0 %v498_v19 }
  0x26   : > { %500 = vmatprep.subr.bf16.mxu0 %v644_v3 }
  0x29   : > { %502 = vmatpush3.bf16.msra.mxu0 %v501_v22 }
  0x2a   : > { %503 = vmatprep.subr.bf16.mxu0 %v644_v3 }
  0x2d   : > { %505 = vmatpush3.bf16.msra.mxu0 %v504_v25 }
  0x30   : > { %480 = vmatmul.mubr.f32.vlgmr.msra.gmra.mrb[0].mxu0 %v211_v26 }
 0x103   : > { %v301_v28 = vpop.f32.mrb[0].mxu0 }
 0x104   : > { %v302_v29 = vadd.f32 %v425_v27, %v301_v28  ;;  %v481_v30 = vpop.f32.mrb[1].mxu0 }
 0x106   : > { %305 = vst [vmem:[%s199_s7] sm:$0xff] %v302_v29 }
 0x107   : > { %577 = shalt.err (!%p574_p5)
}
 0x108   : > { %s578_s26 = scalar_lea.hbm %s784_s11, 128  ;;  %s582_s29 = scalar_lea.hbm %s834_s3, 256 }
 0x109   : > { %p579_p6 = scmp.ne.s32.totalorder %s784_s11, %s578_s26  ;;  %p583_p10 = scmp.lt.u32.totalorder %s784_s11, %s834_s3 }
 0x10a   : > { %p584_p11 = scmp.lt.u32.totalorder %s582_s29, %s578_s26  ;;  %p586_p13 = scmp.lt.u32.totalorder %s578_s26, %s784_s11 }
 0x10b   : > { %p580_p7 = pnand %p579_p6, %p708_p4 }
 0x10c   : > { %p585_p12 = por %p584_p11, %p583_p10 }
 0x10d   : > { %p581_p9 = pneg %p580_p7 }
 0x10e   : > { %p587_p0 = por %p586_p13, %p585_p12 }
 0x110   : > { %p588_p1 = pnand %p587_p0, %p581_p9 }
 0x112   : > { %591 = shalt.err (!%p588_p1)
}
 0x113   : > { %506 = dma.vmem_to_hbm [thread:$0]  (%p708_p4), %s786_s8, 128, %s784_s11, %s307_s18  }
 0x114 PF: > { %p512_p2 = scmp.ge.s32.totalorder %s642_s17, 2  ;;  %s333_s5 = sand.u32 1, %s622_s12  }
 0x115   : > { %s334_s6 = scalar_lea.sflag [#allocation3], %s333_s5 }
 0x116   : > { %p509_p3 = pnand %p512_p2, %p715_p8 }
 0x118   : > { %617 = dma.done.wait (!%p509_p3), %s334_s6, 128  }
 0x119   : > { %619 = vsyncadd (!%p509_p3), %s334_s6, 4294967168  ;;  %s16_s17 = sadd.s32 1, %s642_s17   ;;  %s837_s12 = smov %s626_s13 }
 0x11a   : > { %p13_p5 = scmp.ge.s32.totalorder %s16_s17, 4   ;;  %s838_s13 = smov %s630_s14 }
 0x11b   : > { %s839_s14 = smov %s721_s25  ;;  %s840_s15 = smov %s638_s16 }
 0x11c   : > { %s841_s16 = smov %s843_s20  ;;  %15 = sbr.rel (!%p13_p5) target bundleno = 4 (0x4), region = 73 }
 0x123   :  { %339 = vsyncpa [#allocation3], 1 }
 0x124   :  { %341 = vsyncpa [#allocation3 + $0x1], 1 }

</bundles_post_ra>
